<compile_context>
chip_gen: v7x
topology: tpu7x:2x2x1
jax: 0.10.0
libtpu: 0.0.40
codegen_flags: <defaults>
</compile_context>

<pallas_src>
import functools

import jax
import jax.numpy as jnp
from jax.experimental import pallas as pl
from jax.experimental.pallas import tpu as pltpu


def _round_up(v, m):
    return ((v + m - 1) // m) * m


def _cdiv(a, b):
    return -(-a // b)


def _bce_dice_kernel(logits_ref, targets_ref, bce_ref, inter_ref, denom_ref,
                     bce_acc, inter_acc, denom_acc,
                     *, tn, tf, ks, f, needs_col_mask):
    # Grid = (row-block b, reduction-split p, inner reduction step j).
    # Program ids are read here at the kernel top level (never inside pl.when bodies).
    p = pl.program_id(1)
    j = pl.program_id(2)

    @pl.when(j == 0)
    def _init():
        bce_acc[...] = jnp.zeros_like(bce_acc)
        inter_acc[...] = jnp.zeros_like(inter_acc)
        denom_acc[...] = jnp.zeros_like(denom_acc)

    x = logits_ref[...].astype(jnp.float32)
    z = targets_ref[...].astype(jnp.float32)

    # Numerically stable BCE-with-logits; e is reused for the sigmoid below.
    e = jnp.exp(-jnp.abs(x))
    bce_term = jnp.maximum(x, 0.0) - x * z + jnp.log1p(e)

    # sigmoid(x) = 1/(1+e) for x >= 0, e/(1+e) for x < 0 (exact divide: HBM-bound anyway).
    r = 1.0 / (1.0 + e)
    m1 = jnp.where(x >= 0.0, r, e * r)
    inter_term = m1 * z
    denom_term = m1 + z

    if needs_col_mask:
        # Zero out lanes past the true feature extent (partial / fully-OOB tiles).
        col0 = (p * ks + j) * tf
        col_ok = (jax.lax.broadcasted_iota(jnp.int32, (tn, tf), 1) + col0) < f
        bce_term = jnp.where(col_ok, bce_term, 0.0)
        inter_term = jnp.where(col_ok, inter_term, 0.0)
        denom_term = jnp.where(col_ok, denom_term, 0.0)

    bce_acc[...] += bce_term
    inter_acc[...] += inter_term
    denom_acc[...] += denom_term

    @pl.when(j == ks - 1)
    def _finalize():
        # Deferred cross-lane (XLU) reductions: once per (row-block, split) group.
        bce_row = jnp.sum(bce_acc[...], axis=1, keepdims=True)      # (tn, 1)
        inter_row = jnp.sum(inter_acc[...], axis=1, keepdims=True)  # (tn, 1)
        denom_row = jnp.sum(denom_acc[...], axis=1, keepdims=True)  # (tn, 1)
        bce_ref[...] = jnp.broadcast_to(bce_row, (tn, 128))
        inter_ref[...] = jnp.broadcast_to(inter_row, (tn, 128))
        denom_ref[...] = jnp.broadcast_to(denom_row, (tn, 128))


def bce_dice_loss(logits, targets, *, max_lane_tile=32768):
    """BCEWithLogitsLoss(mean) + SoftDiceLoss for NCHW logits/targets -> scalar f32."""
    n = logits.shape[0]
    x = logits.reshape(n, -1)
    t = targets.reshape(n, -1)
    f = x.shape[1]

    # Row tiling: full N when it fits one block (block dim == full dim is always legal),
    # otherwise 8-row blocks; the wrapper slices away any rows past n.
    tn = n if n <= 8 else 8
    nb = _cdiv(n, tn)

    # Lane tiling: multiples of 128, capped for VMEM but forced to >= 2-4 steps so the
    # BlockSpec pipeline has something to overlap.
    f128 = _round_up(f, 128)
    kf = max(_cdiv(f128, max_lane_tile), min(4, f128 // 128), 1)
    tf = _round_up(_cdiv(f128, kf), 128)
    kf_total = _cdiv(f, tf)                  # tiles actually needed to cover f

    # Split the reduction axis across a second "parallel" grid axis when the batch gives
    # only one row-block, so both v7x TensorCores get work (harmless on v5e/v6e).
    if nb == 1 and kf_total >= 2:
        ps = 2
        ks = _cdiv(kf_total, ps)
    else:
        ps = 1
        ks = kf_total

    # Column mask needed whenever the logical span ps*ks*tf over-covers f.
    needs_col_mask = (ps * ks * tf != f)

    if ps * ks > kf_total:
        # The last split may own a fully out-of-range tile index; clamp its DMA to the last
        # real tile (its contribution is zeroed by the in-kernel column mask).
        def in_idx(b, p, j):
            return (b, jnp.minimum(p * ks + j, kf_total - 1))
    else:
        def in_idx(b, p, j):
            return (b, p * ks + j)

    kernel = functools.partial(_bce_dice_kernel, tn=tn, tf=tf, ks=ks, f=f,
                               needs_col_mask=needs_col_mask)

    out_sds = jax.ShapeDtypeStruct((nb, ps, tn, 128), jnp.float32)
    out_spec = pl.BlockSpec((None, None, tn, 128), lambda b, p, j: (b, p, 0, 0))

    bce_p, inter_p, denom_p = pl.pallas_call(
        kernel,
        out_shape=(out_sds, out_sds, out_sds),
        grid_spec=pltpu.PrefetchScalarGridSpec(
            num_scalar_prefetch=0,
            grid=(nb, ps, ks),
            in_specs=[pl.BlockSpec((tn, tf), in_idx),
                      pl.BlockSpec((tn, tf), in_idx)],
            out_specs=(out_spec, out_spec, out_spec),
            scratch_shapes=[pltpu.VMEM((tn, tf), jnp.float32)] * 3,
        ),
        compiler_params=pltpu.CompilerParams(
            dimension_semantics=("parallel", "parallel", "arbitrary")),
    )(x, t)

    # Tiny combine on lane 0 of the partial outputs: sum the reduction splits, drop padded
    # rows, then do the nonlinear dice math.
    bce_rows = jnp.sum(bce_p[..., 0], axis=1).reshape(nb * tn)[:n]
    inter_rows = jnp.sum(inter_p[..., 0], axis=1).reshape(nb * tn)[:n]
    denom_rows = jnp.sum(denom_p[..., 0], axis=1).reshape(nb * tn)[:n]

    bce = jnp.sum(bce_rows) / (n * f)
    score = (inter_rows + 1e-15) / (denom_rows + 1e-15)
    dice = jnp.sum(score) / n
    return bce + (1.0 - dice)


def _reference(logits, targets):
    # Pure-JAX mirror of the PyTorch BCEDiceLoss module.
    n = logits.shape[0]
    x = logits.reshape(-1).astype(jnp.float32)
    z = targets.reshape(-1).astype(jnp.float32)
    bce = jnp.mean(jnp.maximum(x, 0.0) - x * z + jnp.log1p(jnp.exp(-jnp.abs(x))))
    m1 = jax.nn.sigmoid(logits.reshape(n, -1).astype(jnp.float32))
    m2 = targets.reshape(n, -1).astype(jnp.float32)
    inter = jnp.sum(m1 * m2, axis=1)
    score = (inter + 1e-15) / (jnp.sum(m1, axis=1) + jnp.sum(m2, axis=1) + 1e-15)
    dice = jnp.sum(score) / n
    return bce + (1.0 - dice)


if __name__ == "__main__":
    key = jax.random.PRNGKey(0)

    # Primary small test consistent with a 2D segmentation head: N=2, C=4, H=W=16.
    k1, k2, key = jax.random.split(key, 3)
    logits = jax.random.normal(k1, (2, 4, 16, 16), dtype=jnp.float32)
    targets = (jax.random.uniform(k2, (2, 4, 16, 16)) > 0.5).astype(jnp.float32)
    loss = bce_dice_loss(logits, targets)
    jax.block_until_ready(loss)
    ref = _reference(logits, targets)
    assert jnp.allclose(loss, ref, rtol=1e-3, atol=1e-3), (loss, ref)

    # Extra coverage: non-128-multiple F (col mask + clamped tile), multi-tile F (grid
    # accumulation + finalize), N > 8 (partial row block + wrapper slicing), and bf16
    # input streaming (in-kernel upcast only).
    cases = (
        ((2, 3, 10, 10), 32768, jnp.float32),
        ((2, 4, 32, 32), 1024, jnp.float32),
        ((10, 1, 16, 16), 32768, jnp.float32),
        ((2, 4, 16, 16), 32768, jnp.bfloat16),
    )
    for shape, lane_tile, dtype in cases:
        k1, k2, key = jax.random.split(key, 3)
        lg = jax.random.normal(k1, shape, dtype=dtype)
        tg = (jax.random.uniform(k2, shape) > 0.5).astype(dtype)
        out = bce_dice_loss(lg, tg, max_lane_tile=lane_tile)
        jax.block_until_ready(out)
        assert jnp.allclose(out, _reference(lg, tg), rtol=2e-3, atol=2e-3), shape

    print("KERNEL_OK")
</pallas_src>

<mosaic_0001>
module attributes {stable_mosaic.version = 11 : i64} {
  func.func @_bce_dice_kernel(%arg0: i32, %arg1: i32, %arg2: i32, %arg3: memref<2x256xf32, #tpu.memory_space<vmem>>, %arg4: memref<2x256xf32, #tpu.memory_space<vmem>>, %arg5: memref<1x1x2x128xf32, #tpu.memory_space<vmem>>, %arg6: memref<1x1x2x128xf32, #tpu.memory_space<vmem>>, %arg7: memref<1x1x2x128xf32, #tpu.memory_space<vmem>>, %arg8: memref<2x256xf32, #tpu.memory_space<vmem>>, %arg9: memref<2x256xf32, #tpu.memory_space<vmem>>, %arg10: memref<2x256xf32, #tpu.memory_space<vmem>>) attributes {dimension_semantics = [#tpu.dimension_semantics<parallel>, #tpu.dimension_semantics<parallel>, #tpu.dimension_semantics<arbitrary>], iteration_bounds = array<i64: 1, 2, 2>, scalar_prefetch = 0 : i64, scratch_operands = 3 : i64, tpu.core_type = #tpu.core_type<tc>, window_params = [{transform_indices = @transform_0, window_bounds = array<i64: 2, 256>}, {transform_indices = @transform_1, window_bounds = array<i64: 2, 256>}, {transform_indices = @transform_2, window_bounds = array<i64: 1, 1, 2, 128>}, {transform_indices = @transform_3, window_bounds = array<i64: 1, 1, 2, 128>}, {transform_indices = @transform_4, window_bounds = array<i64: 1, 1, 2, 128>}]} {
    %c0_i32 = arith.constant 0 : i32
    %0 = arith.cmpi eq, %arg2, %c0_i32 : i32
    %1 = arith.extui %0 : i1 to i32
    %c0_i32_0 = arith.constant 0 : i32
    %2 = arith.cmpi ne, %1, %c0_i32_0 : i32
    scf.if %2 {
      %cst_21 = arith.constant 0.000000e+00 : f32
      %37 = vector.broadcast %cst_21 : f32 to vector<2x256xf32>
      %c0_22 = arith.constant 0 : index
      %c0_23 = arith.constant 0 : index
      %38 = vector.load %arg8[%c0_22, %c0_23] : memref<2x256xf32, #tpu.memory_space<vmem>>, vector<2x256xf32>
      tpu.vector_store %arg8[%c0_22, %c0_23], %37 {strides = array<i32>} : memref<2x256xf32, #tpu.memory_space<vmem>>, vector<2x256xf32>,
      %cst_24 = arith.constant 0.000000e+00 : f32
      %39 = vector.broadcast %cst_24 : f32 to vector<2x256xf32>
      %c0_25 = arith.constant 0 : index
      %c0_26 = arith.constant 0 : index
      %40 = vector.load %arg9[%c0_25, %c0_26] : memref<2x256xf32, #tpu.memory_space<vmem>>, vector<2x256xf32>
      tpu.vector_store %arg9[%c0_25, %c0_26], %39 {strides = array<i32>} : memref<2x256xf32, #tpu.memory_space<vmem>>, vector<2x256xf32>,
      %cst_27 = arith.constant 0.000000e+00 : f32
      %41 = vector.broadcast %cst_27 : f32 to vector<2x256xf32>
      %c0_28 = arith.constant 0 : index
      %c0_29 = arith.constant 0 : index
      %42 = vector.load %arg10[%c0_28, %c0_29] : memref<2x256xf32, #tpu.memory_space<vmem>>, vector<2x256xf32>
      tpu.vector_store %arg10[%c0_28, %c0_29], %41 {strides = array<i32>} : memref<2x256xf32, #tpu.memory_space<vmem>>, vector<2x256xf32>,
    } else {
    }
    %c0 = arith.constant 0 : index
    %c0_1 = arith.constant 0 : index
    %3 = vector.load %arg3[%c0, %c0_1] : memref<2x256xf32, #tpu.memory_space<vmem>>, vector<2x256xf32>
    %c0_2 = arith.constant 0 : index
    %c0_3 = arith.constant 0 : index
    %4 = vector.load %arg4[%c0_2, %c0_3] : memref<2x256xf32, #tpu.memory_space<vmem>>, vector<2x256xf32>
    %5 = math.absf %3 : vector<2x256xf32>
    %cst = arith.constant 0.000000e+00 : f32
    %6 = vector.broadcast %cst : f32 to vector<2x256xf32>
    %7 = arith.subf %6, %5 : vector<2x256xf32>
    %8 = math.exp %7 : vector<2x256xf32>
    %cst_4 = arith.constant 0.000000e+00 : f32
    %9 = vector.broadcast %cst_4 : f32 to vector<2x256xf32>
    %10 = arith.maximumf %3, %9 : vector<2x256xf32>
    %11 = arith.mulf %3, %4 : vector<2x256xf32>
    %12 = arith.subf %10, %11 : vector<2x256xf32>
    %13 = math.log1p %8 : vector<2x256xf32>
    %14 = arith.addf %12, %13 : vector<2x256xf32>
    %cst_5 = arith.constant 1.000000e+00 : f32
    %15 = vector.broadcast %cst_5 : f32 to vector<2x256xf32>
    %16 = arith.addf %15, %8 : vector<2x256xf32>
    %cst_6 = arith.constant 1.000000e+00 : f32
    %17 = vector.broadcast %cst_6 : f32 to vector<2x256xf32>
    %18 = arith.divf %17, %16 : vector<2x256xf32>
    %cst_7 = arith.constant 0.000000e+00 : f32
    %19 = vector.broadcast %cst_7 : f32 to vector<2x256xf32>
    %20 = arith.cmpf oge, %3, %19 : vector<2x256xf32>
    %21 = arith.mulf %8, %18 : vector<2x256xf32>
    %22 = arith.select %20, %18, %21 : vector<2x256xi1>, vector<2x256xf32>
    %23 = arith.mulf %22, %4 : vector<2x256xf32>
    %24 = arith.addf %22, %4 : vector<2x256xf32>
    %c0_8 = arith.constant 0 : index
    %c0_9 = arith.constant 0 : index
    %25 = vector.load %arg8[%c0_8, %c0_9] : memref<2x256xf32, #tpu.memory_space<vmem>>, vector<2x256xf32>
    %26 = arith.addf %25, %14 : vector<2x256xf32>
    %c0_10 = arith.constant 0 : index
    %c0_11 = arith.constant 0 : index
    %27 = vector.load %arg8[%c0_10, %c0_11] : memref<2x256xf32, #tpu.memory_space<vmem>>, vector<2x256xf32>
    tpu.vector_store %arg8[%c0_10, %c0_11], %26 {strides = array<i32>} : memref<2x256xf32, #tpu.memory_space<vmem>>, vector<2x256xf32>,
    %c0_12 = arith.constant 0 : index
    %c0_13 = arith.constant 0 : index
    %28 = vector.load %arg9[%c0_12, %c0_13] : memref<2x256xf32, #tpu.memory_space<vmem>>, vector<2x256xf32>
    %29 = arith.addf %28, %23 : vector<2x256xf32>
    %c0_14 = arith.constant 0 : index
    %c0_15 = arith.constant 0 : index
    %30 = vector.load %arg9[%c0_14, %c0_15] : memref<2x256xf32, #tpu.memory_space<vmem>>, vector<2x256xf32>
    tpu.vector_store %arg9[%c0_14, %c0_15], %29 {strides = array<i32>} : memref<2x256xf32, #tpu.memory_space<vmem>>, vector<2x256xf32>,
    %c0_16 = arith.constant 0 : index
    %c0_17 = arith.constant 0 : index
    %31 = vector.load %arg10[%c0_16, %c0_17] : memref<2x256xf32, #tpu.memory_space<vmem>>, vector<2x256xf32>
    %32 = arith.addf %31, %24 : vector<2x256xf32>
    %c0_18 = arith.constant 0 : index
    %c0_19 = arith.constant 0 : index
    %33 = vector.load %arg10[%c0_18, %c0_19] : memref<2x256xf32, #tpu.memory_space<vmem>>, vector<2x256xf32>
    tpu.vector_store %arg10[%c0_18, %c0_19], %32 {strides = array<i32>} : memref<2x256xf32, #tpu.memory_space<vmem>>, vector<2x256xf32>,
    %c1_i32 = arith.constant 1 : i32
    %34 = arith.cmpi eq, %arg2, %c1_i32 : i32
    %35 = arith.extui %34 : i1 to i32
    %c0_i32_20 = arith.constant 0 : i32
    %36 = arith.cmpi ne, %35, %c0_i32_20 : i32
    scf.if %36 {
      %c0_21 = arith.constant 0 : index
      %c0_22 = arith.constant 0 : index
      %37 = vector.load %arg8[%c0_21, %c0_22] : memref<2x256xf32, #tpu.memory_space<vmem>>, vector<2x256xf32>
      %cst_23 = arith.constant dense<0.000000e+00> : vector<2xf32>
      %38 = vector.multi_reduction <add>, %37, %cst_23 [1] : vector<2x256xf32> to vector<2xf32>
      %39 = vector.shape_cast %38 : vector<2xf32> to vector<2x1xf32>
      %c0_24 = arith.constant 0 : index
      %c0_25 = arith.constant 0 : index
      %40 = vector.load %arg9[%c0_24, %c0_25] : memref<2x256xf32, #tpu.memory_space<vmem>>, vector<2x256xf32>
      %cst_26 = arith.constant dense<0.000000e+00> : vector<2xf32>
      %41 = vector.multi_reduction <add>, %40, %cst_26 [1] : vector<2x256xf32> to vector<2xf32>
      %42 = vector.shape_cast %41 : vector<2xf32> to vector<2x1xf32>
      %c0_27 = arith.constant 0 : index
      %c0_28 = arith.constant 0 : index
      %43 = vector.load %arg10[%c0_27, %c0_28] : memref<2x256xf32, #tpu.memory_space<vmem>>, vector<2x256xf32>
      %cst_29 = arith.constant dense<0.000000e+00> : vector<2xf32>
      %44 = vector.multi_reduction <add>, %43, %cst_29 [1] : vector<2x256xf32> to vector<2xf32>
      %45 = vector.shape_cast %44 : vector<2xf32> to vector<2x1xf32>
      %46 = vector.shape_cast %39 : vector<2x1xf32> to vector<2x1xf32>
      %47 = vector.broadcast %46 : vector<2x1xf32> to vector<2x128xf32>
      %c0_30 = arith.constant 0 : index
      %c0_31 = arith.constant 0 : index
      %c0_32 = arith.constant 0 : index
      %c0_33 = arith.constant 0 : index
      %48 = vector.load %arg5[%c0_30, %c0_31, %c0_32, %c0_33] : memref<1x1x2x128xf32, #tpu.memory_space<vmem>>, vector<1x1x2x128xf32>
      %49 = vector.shape_cast %48 : vector<1x1x2x128xf32> to vector<2x128xf32>
      %50 = vector.shape_cast %47 : vector<2x128xf32> to vector<1x1x2x128xf32>
      tpu.vector_store %arg5[%c0_30, %c0_31, %c0_32, %c0_33], %50 {strides = array<i32>} : memref<1x1x2x128xf32, #tpu.memory_space<vmem>>, vector<1x1x2x128xf32>,
      %51 = vector.shape_cast %42 : vector<2x1xf32> to vector<2x1xf32>
      %52 = vector.broadcast %51 : vector<2x1xf32> to vector<2x128xf32>
      %c0_34 = arith.constant 0 : index
      %c0_35 = arith.constant 0 : index
      %c0_36 = arith.constant 0 : index
      %c0_37 = arith.constant 0 : index
      %53 = vector.load %arg6[%c0_34, %c0_35, %c0_36, %c0_37] : memref<1x1x2x128xf32, #tpu.memory_space<vmem>>, vector<1x1x2x128xf32>
      %54 = vector.shape_cast %53 : vector<1x1x2x128xf32> to vector<2x128xf32>
      %55 = vector.shape_cast %52 : vector<2x128xf32> to vector<1x1x2x128xf32>
      tpu.vector_store %arg6[%c0_34, %c0_35, %c0_36, %c0_37], %55 {strides = array<i32>} : memref<1x1x2x128xf32, #tpu.memory_space<vmem>>, vector<1x1x2x128xf32>,
      %56 = vector.shape_cast %45 : vector<2x1xf32> to vector<2x1xf32>
      %57 = vector.broadcast %56 : vector<2x1xf32> to vector<2x128xf32>
      %c0_38 = arith.constant 0 : index
      %c0_39 = arith.constant 0 : index
      %c0_40 = arith.constant 0 : index
      %c0_41 = arith.constant 0 : index
      %58 = vector.load %arg7[%c0_38, %c0_39, %c0_40, %c0_41] : memref<1x1x2x128xf32, #tpu.memory_space<vmem>>, vector<1x1x2x128xf32>
      %59 = vector.shape_cast %58 : vector<1x1x2x128xf32> to vector<2x128xf32>
      %60 = vector.shape_cast %57 : vector<2x128xf32> to vector<1x1x2x128xf32>
      tpu.vector_store %arg7[%c0_38, %c0_39, %c0_40, %c0_41], %60 {strides = array<i32>} : memref<1x1x2x128xf32, #tpu.memory_space<vmem>>, vector<1x1x2x128xf32>,
    } else {
    }
    return
  }
  func.func @transform_0(%arg0: i32, %arg1: i32, %arg2: i32) -> (i32, i32) {
    %c2_i32 = arith.constant 2 : i32
    %0 = arith.muli %arg1, %c2_i32 : i32
    %1 = arith.addi %0, %arg2 : i32
    %c0_i32 = arith.constant 0 : i32
    return %arg0, %1 : i32, i32
  }
  func.func @transform_1(%arg0: i32, %arg1: i32, %arg2: i32) -> (i32, i32) {
    %c2_i32 = arith.constant 2 : i32
    %0 = arith.muli %arg1, %c2_i32 : i32
    %1 = arith.addi %0, %arg2 : i32
    %c0_i32 = arith.constant 0 : i32
    return %arg0, %1 : i32, i32
  }
  func.func @transform_2(%arg0: i32, %arg1: i32, %arg2: i32) -> (i32, i32, i32, i32) {
    %c0_i32 = arith.constant 0 : i32
    %c0_i32_0 = arith.constant 0 : i32
    %c0_i32_1 = arith.constant 0 : i32
    return %arg0, %arg1, %c0_i32, %c0_i32_0 : i32, i32, i32, i32
  }
  func.func @transform_3(%arg0: i32, %arg1: i32, %arg2: i32) -> (i32, i32, i32, i32) {
    %c0_i32 = arith.constant 0 : i32
    %c0_i32_0 = arith.constant 0 : i32
    %c0_i32_1 = arith.constant 0 : i32
    return %arg0, %arg1, %c0_i32, %c0_i32_0 : i32, i32, i32, i32
  }
  func.func @transform_4(%arg0: i32, %arg1: i32, %arg2: i32) -> (i32, i32, i32, i32) {
    %c0_i32 = arith.constant 0 : i32
    %c0_i32_0 = arith.constant 0 : i32
    %c0_i32_1 = arith.constant 0 : i32
    return %arg0, %arg1, %c0_i32, %c0_i32_0 : i32, i32, i32, i32
  }
}

</mosaic_0001>

<bundles_post_ra>
// kernel: tpu_custom_call.1
= control target key start
LH: loop header
LB: loop body
LE: loop exit
PB: predicated region body
PF: predicated region fallthrough
CT: control target
= control target key end

     0   :  { %s1466_s0 = inlined_call_operand.hbm [shape: f32[2,1024], index: 0, kind: input, shape index: {}]   ;;  %s1467_s1 = inlined_call_operand.hbm [shape: f32[2,1024], index: 1, kind: input, shape index: {}]   ;;  %s1468_s2 = inlined_call_operand.hbm [shape: f32[1,2,2,128], index: 2, kind: output, shape index: {0}]   ;;  %s1469_s3 = inlined_call_operand.hbm [shape: f32[1,2,2,128], index: 3, kind: output, shape index: {1}]   ;;  %s1470_s4 = inlined_call_operand.hbm [shape: f32[1,2,2,128], index: 4, kind: output, shape index: {2}]  }
   0x1   :  { %1480 = sst [smem:[#allocation23_spill]] %s1466_s0 }
   0x2   :  { %10 = vsyncpa [#allocation6], 0 }
   0x3   :  { %12 = vsyncpa [#allocation6 + $0x1], 0 }
   0x4   :  { %13 = vsyncpa [#allocation9], 0 }
   0x5   :  { %15 = vsyncpa [#allocation9 + $0x1], 0 }
   0x6   :  { %16 = vsyncpa [#allocation7], 0 }
   0x7   :  { %18 = vsyncpa [#allocation7 + $0x1], 0 }
   0x8   :  { %19 = vsyncpa [#allocation12], 0 }
   0x9   :  { %21 = vsyncpa [#allocation12 + $0x1], 0  ;;  %s1103_s15 = smov 0   ;;  %s1105_s16 = smov 0  }
   0xa   :  { %s1107_s17 = smov 0   ;;  %s1109_s18 = smov 0  }
   0xb   :  { %s1111_s19 = smov 0   ;;  %s1113_s20 = smov 0  }
   0xc   :  { %s1115_s21 = smov 0   ;;  %s1117_s22 = smov 0  }
   0xd   :  { %s1119_s23 = smov 0   ;;  %s1121_s24 = smov 0  }
   0xe   :  { %s1123_s25 = smov 0  }
   0xf LB: > { %1481 = sst [smem:[#allocation18_spill]] %s1062_s23  ;;  %s1157_s26 = sadd.s32 4294967295, %s1070_s25   ;;  %s1070_s25 = sphi %s1123_s25, %s27_s25   ;;  %s1066_s24 = sphi %s1121_s24, %s1506_s24   ;;  %s1062_s23 = sphi %s1119_s23, %s1505_s23   ;;  %s1058_s22 = sphi %s1117_s22, %s1504_s22   ;;  %s1054_s21 = sphi %s1115_s21, %s1503_s21   ;;  %s1050_s20 = sphi %s1113_s20, %s1512_s20   ;;  %s1046_s19 = sphi %s1111_s19, %s1511_s19   ;;  %s1042_s18 = sphi %s1109_s18, %s1510_s18   ;;  %s1038_s17 = sphi %s1107_s17, %s1509_s17   ;;  %s1034_s16 = sphi %s1105_s16, %s1508_s16   ;;  %s1030_s15 = sphi %s1103_s15, %s1507_s15  }
  0x10   : > { %1482 = sst [smem:[#allocation19_spill]] %s1066_s24  ;;  %s1472_s27 = sadd.s32 4294967294, %s1070_s25  }
  0x11   : > { %s39_s28 = sadd.s32 1, %s1062_s23  ;;  %s42_s29 = sadd.s32 1, %s1066_s24 }
  0x12   : > { %p40_p0 = scmp.ge.s32.totalorder %s39_s28, 2  ;;  %s665_s30 = sshll.u32 %s1066_s24, 1 }
  0x13   : > { %s1164_s5 = sadd.s32 %s1062_s23, %s665_s30  ;;  %s59_s6 = sadd.s32 1, %s1050_s20 }
  0x14   : > { %s1514_s28 = smov (%p40_p0, %s39_s28), 0  ;;  %s1516_s29 = smov (!%p40_p0, %s42_s29), %s1066_s24 }
  0x15   : > { %1483 = sst [smem:[#allocation20_spill]] %s1514_s28  ;;  %p66_p1 = scmp.ne.s32.totalorder %s1050_s20, %s1046_s19 }
  0x16   : > { %p67_p2 = scmp.eq.s32.totalorder %s1070_s25, 0  ;;  %p44_p3 = scmp.ge.s32.totalorder %s1516_s29, 2 }
  0x17   : > { %p72_p4 = scmp.ne.s32.totalorder %s1046_s19, %s1042_s18  ;;  %p73_p6 = scmp.eq.s32.totalorder %s1157_s26, 0 }
  0x18   : > { %p1174_p5 = por %p67_p2, %p66_p1  ;;  %s1518_s29 = smov (%p44_p3, %s1516_s29), 0 }
  0x19   : > { %1485 = sst [smem:[#allocation21_spill]] %s1518_s29  ;;  %p1181_p7 = por %p73_p6, %p72_p4 }
  0x1a   : > { %s119_s9 = sadd.s32 1, %s1038_s17  ;;  %s666_s10 = sshll.u32 %s1518_s29, 1 }
  0x1b   : > { %s1486_s8 = scalar_select %p1181_p7, 1, 0 }
  0x1c   : > { %s115_s11 = ssub.s32 %s1066_s24, %s1518_s29  ;;  %s53_s12 = sadd.s32 %s666_s10, %s1514_s28 }
  0x1d   : > { %p117_p8 = scmp.eq.s32.totalorder %s115_s11, 0  ;;  %s55_s13 = ssub.s32 %s1164_s5, %s53_s12 }
  0x1e   : > { %p129_p9 = scmp.ne.s32.totalorder %s1038_s17, %s1034_s16  ;;  %p57_p10 = scmp.eq.s32.totalorder %s55_s13, 0 }
  0x1f   : > { %p130_p11 = scmp.eq.s32.totalorder %s1157_s26, 3  ;;  %p135_p13 = scmp.ne.s32.totalorder %s1034_s16, %s1030_s15 }
  0x20   : > { %s1195_s14 = scalar_select %p117_p8, %s1038_s17, %s119_s9  }
  0x21   : > { %s1198_s18 = scalar_select %p57_p10, %s1050_s20, %s59_s6  }
  0x22   : > { %p1200_p12 = por %p130_p11, %p129_p9  ;;  %p136_p0 = scmp.eq.s32.totalorder %s1472_s27, 3 }
  0x23   : > { %1487 = sst [smem:[#allocation22_spill]] %s1198_s18  ;;  %p727_p1 = scmp.lt.s32.totalorder %s1070_s25, 4 }
  0x24   : > { %s1488_s30 = scalar_select %p1200_p12, 1, 0 }
  0x25   : > { %s1210_s10 = sand.u32 1, %s1050_s20   ;;  %p1212_p2 = por %p136_p0, %p135_p13 }
  0x26   : > { %s1475_s9 = sshll.u32 %s1210_s10, 2  ;;  %s1476_s6 = sshll.u32 %s1164_s5, 6 }
  0x27   : > { %s1489_s11 = scalar_select %p1212_p2, 1, 0 }
  0x28   : > { %s1490_s0 = sld [smem:[#allocation23_spill]]  ;;  %s216_s27 = scalar_lea.vmem [#allocation5], %s1475_s9 }
  0x29   : > { %s228_s28 = sshll.u32 %s216_s27, 4  ;;  %p1229_p3 = pnand %p727_p1, %p1174_p5  ;;  %s1233_s28 = int_to_ptr.vmem [resolvable:$true] %s228_s28 }
  0x2a   : > { %s213_s12 = scalar_lea.sflag [#allocation6], %s1210_s10 }
  0x2b   : > { %p826_p9 = pneg %p1229_p3 }
  0x2e   : > { %s1223_s29 = scalar_lea.hbm %s1490_s0, %s1476_s6  ;;  %s829_s9 = scalar_lea.hbm %s1490_s0, 256 }
  0x2f   : > { %s824_s13 = scalar_lea.hbm %s1223_s29, 64  ;;  %p830_p5 = scmp.lt.u32.totalorder %s1223_s29, %s1490_s0 }
  0x30   : > { %p825_p8 = scmp.ne.s32.totalorder %s1223_s29, %s824_s13  ;;  %p831_p13 = scmp.lt.u32.totalorder %s829_s9, %s824_s13 }
  0x31   : > { %p833_p1 = scmp.lt.u32.totalorder %s824_s13, %s1223_s29 }
  0x32   : > { %p827_p10 = pnand %p826_p9, %p825_p8  ;;  %p832_p0 = por %p831_p13, %p830_p5 }
  0x34   : > { %p828_p11 = pneg %p827_p10  ;;  %p834_p4 = por %p833_p1, %p832_p0 }
  0x36   : > { %p835_p6 = pnand %p834_p4, %p828_p11 }
  0x38   : > { %838 = shalt.err (!%p835_p6)
}
  0x39   : > { %s839_s18 = scalar_lea.vmem %s1233_s28, 64  ;;  %s1072_s27 = smov [#allocation5]  }
  0x3a   : > { %p840_p8 = scmp.ne.s32.totalorder %s1233_s28, %s839_s18  ;;  %s844_s7 = sshll.u32 %s1072_s27, 4  ;;  %s845_s7 = int_to_ptr.vmem [resolvable:$false] %s844_s7 }
  0x3b   : > { %s846_s23 = scalar_lea.vmem %s845_s7, 128  ;;  %p847_p12 = scmp.lt.s32.totalorder %s1233_s28, %s845_s7 }
  0x3c   : > { %p842_p10 = pnand %p840_p8, %p826_p9  ;;  %p848_p5 = scmp.lt.s32.totalorder %s846_s23, %s839_s18 }
  0x3e   : > { %p843_p2 = pneg %p842_p10  ;;  %p849_p13 = por %p848_p5, %p847_p12 }
  0x40   : > { %p850_p0 = pnand %p849_p13, %p843_p2 }
  0x42   : > { %853 = shalt.err (!%p850_p0)
}
  0x43   : > { %713 = dma.hbm_to_vmem [thread:$0]  (!%p1229_p3), %s1223_s29, 64, %s1233_s28, %s213_s12  }
  0x44   : > { %p1492_p4 = scmp.lt.s32.totalorder %s1070_s25, 5  ;;  %p1493_p6 = scmp.ge.s32.totalorder %s1070_s25, 1 }
  0x45   : > { %s1495_s18 = sshll.u32 %s1164_s5, 6  ;;  %s1496_s7 = sshll.u32 %s1210_s10, 2 }
  0x46   : > { %p1267_p11 = pnand %p1493_p6, %p1492_p4  ;;  %s1276_s27 = scalar_lea.hbm %s1467_s1, %s1495_s18 }
  0x47   : > { %s239_s23 = scalar_lea.vmem [#allocation8], %s1496_s7  ;;  %s236_s28 = scalar_lea.sflag [#allocation9], %s1210_s10 }
  0x48   : > { %s1494_s9 = scalar_select %p1267_p11, 1, 0 }
  0x49   : > { %s251_s0 = sshll.u32 %s239_s23, 4  ;;  %s854_s29 = scalar_lea.hbm %s1276_s27, 64  ;;  %s252_s0 = int_to_ptr.vmem [resolvable:$true] %s251_s0 }
  0x4a   : > { %p855_p12 = scmp.ne.s32.totalorder %s1276_s27, %s854_s29  ;;  %s859_s18 = scalar_lea.hbm %s1467_s1, 256 }
  0x4b   : > { %p860_p8 = scmp.lt.u32.totalorder %s1276_s27, %s1467_s1  ;;  %p861_p10 = scmp.lt.u32.totalorder %s859_s18, %s854_s29 }
  0x4c   : > { %p857_p2 = pnand %p855_p12, %p826_p9  ;;  %p863_p13 = scmp.lt.u32.totalorder %s854_s29, %s1276_s27 }
  0x4d   : > { %p862_p5 = por %p861_p10, %p860_p8 }
  0x4e   : > { %p858_p1 = pneg %p857_p2 }
  0x4f   : > { %p864_p0 = por %p863_p13, %p862_p5 }
  0x51   : > { %p865_p4 = pnand %p864_p0, %p858_p1 }
  0x53   : > { %868 = shalt.err (!%p865_p4)
}
  0x54   : > { %s869_s10 = scalar_lea.vmem %s252_s0, 64  ;;  %s1073_s7 = smov [#allocation8]  }
  0x55   : > { %p870_p6 = scmp.ne.s32.totalorder %s252_s0, %s869_s10  ;;  %s874_s23 = sshll.u32 %s1073_s7, 4  ;;  %s875_s23 = int_to_ptr.vmem [resolvable:$false] %s874_s23 }
  0x56   : > { %s876_s5 = scalar_lea.vmem %s875_s23, 128  ;;  %p877_p7 = scmp.lt.s32.totalorder %s252_s0, %s875_s23 }
  0x57   : > { %p872_p12 = pnand %p870_p6, %p826_p9  ;;  %p878_p11 = scmp.lt.s32.totalorder %s876_s5, %s869_s10 }
  0x59   : > { %p873_p2 = pneg %p872_p12  ;;  %p879_p8 = por %p878_p11, %p877_p7 }
  0x5b   : > { %p880_p10 = pnand %p879_p8, %p873_p2 }
  0x5d   : > { %883 = shalt.err (!%p880_p10)
}
  0x5e   : > { %716 = dma.hbm_to_vmem [thread:$0]  (!%p1229_p3), %s1276_s27, 64, %s252_s0, %s236_s28  }
  0x5f   : > { %p1497_p1 = scmp.ne.s32.totalorder %s1494_s9, 0 }
  0x60   : > { %s262_s29 = sand.u32 (!%p1497_p1), 1, %s1046_s19   ;;  %p1498_p9 = scmp.ne.s32.totalorder (!%p1497_p1), %s1486_s8, 0 }
  0x61   : > { %260 = sbr.rel (%p1497_p1) target bundleno = 387 (0x183), region = 28  ;;  %s680_s12 = sshll.u32 (!%p1497_p1), %s262_s29, 2 }
  0x62   : > { %s263_s18 = scalar_lea.sflag (!%p1497_p1), [#allocation6], %s262_s29  ;;  %s266_s6 = scalar_lea.vmem (!%p1497_p1), [#allocation5], %s680_s12 }
  0x68   : > { %1013 = dma.done.wait (%p1498_p9), %s263_s18, 64  }
  0x69   : > { %1015 = vsyncadd (%p1498_p9), %s263_s18, 4294967232  ;;  %s272_s13 = scalar_lea.sflag [#allocation9], %s262_s29  ;;  %s275_s10 = scalar_lea.vmem [#allocation8], %s680_s12 }
  0x6a   : > { %1017 = dma.done.wait (%p1498_p9), %s272_s13, 64  }
  0x6b   : > { %1019 = vsyncadd (%p1498_p9), %s272_s13, 4294967232  ;;  %s298_s0 = sand.u32 1, %s1034_s16   ;;  %p685_p7 = scmp.ne.s32.totalorder %s1054_s21, 0 }
  0x6c   : > { %s1314_s24 = sshll.u32 %s298_s0, 1  ;;  %v1074_v0 = vmov (!%p685_p7), 0.0  }
  0x6d   : > { %s300_s9 = scalar_lea.vmem [#allocation10], %s1314_s24  ;;  %s307_s27 = scalar_lea.vmem [#allocation11], %s1314_s24  ;;  %325 = vst [vmem:[#allocation2] sm:$0xf] (!%p685_p7), %v1074_v0  ;;  %326 = vst [vmem:[#allocation3] sm:$0xf] (!%p685_p7), %v1074_v0 }
  0x6e   : > { %s314_s28 = scalar_lea.vmem [#allocation13], %s1314_s24  ;;  %324 = sbr.rel (%p685_p7) target bundleno = 117 (0x75), region = 40  ;;  %327 = vst [vmem:[#allocation4] sm:$0xf] (!%p685_p7), %v1074_v0 }
  0x75 PF: > { %v328_v1 = vld [vmem:[%s266_s6] sm:$0xf]  ;;  %v329_v8 = vld [vmem:[%s275_s10] sm:$0xf]  ;;  %v355_v20 = vld [vmem:[#allocation2] sm:$0xf] }
  0x76   : > { %v330_v2 = vand.u32 2147483647, %v328_v1  ;;  %v334_v10 = vmax.f32 %v328_v1, 0.0  ;;  %v335_v11 = vmul.f32 %v329_v8, %v328_v1  ;;  %vm350_vm1 = vcmp.ge.f32.partialorder %v328_v1, 0.0  ;;  %v358_v23 = vld [vmem:[#allocation3] sm:$0xf] }
  0x77   : > { %v361_v24 = vld [vmem:[#allocation4] sm:$0xf]  ;;  %p686_p3 = scmp.ne.s32.totalorder %s1054_s21, 1 }
  0x78   : > { %v331_v3 = vsub.f32 0.0, %v330_v2  ;;  %v336_v15 = vsub.f32 %v334_v10, %v335_v11  ;;  %vm380_vm2 = vcmask (!%p686_p3), 1041408  }
  0x7a   : > { %v332_v4 = vmul.f32 1.442695, %v331_v3 }
  0x7c   : > { %818 = vpow2.f32 %v332_v4 }
  0x86   : > { %v819_v5 = vpop.eup %818 }
  0x87   : > { %v337_v6 = vadd.f32 1.0, %v819_v5  ;;  %v340_v7 = vmul.f32 -0.5, %v819_v5  ;;  %v343_v12 = vand.u32 2147483647, %v819_v5 }
  0x89   : > { %820 = vlog2.f32 %v337_v6  ;;  %v341_v9 = vadd.f32 1.0, %v340_v7  ;;  %vm344_vm0 = vcmp.lt.f32.partialorder %v343_v12, 0.0004427343 }
  0x8a   : > { %822 = vrcp.f32 %v337_v6 }
  0x8b   : > { %v342_v13 = vmul.f32 %v819_v5, %v341_v9 }
  0x93   : > { %v821_v14 = vpop.eup %820 }
  0x94   : > { %v823_v16 = vpop.eup %822  ;;  %v339_v17 = vmul.f32 0.6931472, %v821_v14 }
  0x95   : > { %v351_v18 = vmul.f32 %v823_v16, %v819_v5 }
  0x96   : > { %v345_v19 = vsel %vm344_vm0, %v342_v13, %v339_v17  ;;  %367 = sbr.rel (%p686_p3) target bundleno = 315 (0x13b), region = 44 }
  0x97   : > { %v346_v21 = vadd.f32 %v345_v19, %v336_v15  ;;  %v352_v22 = vsel %vm350_vm1, %v823_v16, %v351_v18 }
  0x98   : > { %v353_v25 = vmul.f32 %v352_v22, %v329_v8  ;;  %v354_v26 = vadd.f32 %v352_v22, %v329_v8 }
  0x99   : > { %v356_v27 = vadd.f32 %v355_v20, %v346_v21 }
  0x9a   : > { %v359_v28 = vadd.f32 %v358_v23, %v353_v25  ;;  %v362_v29 = vadd.f32 %v361_v24, %v354_v26 }
  0x9b   : > { %357 = vst [vmem:[#allocation2] sm:$0xf] %v356_v27 }
  0x9c   : > { %360 = vst [vmem:[#allocation3] sm:$0xf] %v359_v28  ;;  %363 = vst [vmem:[#allocation4] sm:$0xf] %v362_v29 }
  0xa2   : > { %v687_v30 = vld.sshfl [vmem:[#allocation2] sm:$0x33 pattern:$0x76325410] }
  0xa3   : > { %v377_v31 = vcombine.high %v687_v30, %v687_v30  ;;  %v381_v32 = vsel %vm380_vm2, %v687_v30, 0.0  ;;  %v689_v33 = vld.sshfl [vmem:[#allocation4] sm:$0x33 pattern:$0x76325410] }
  0xa4   : > { %v412_v34 = vcombine.high %v689_v33, %v689_v33  ;;  %v415_v35 = vsel %vm380_vm2, %v689_v33, 0.0  ;;  %v688_v36 = vld.sshfl [vmem:[#allocation3] sm:$0x33 pattern:$0x76325410] }
  0xa5   : > { %v382_v37 = vsel %vm380_vm2, %v377_v31, 0.0  ;;  %v395_v38 = vcombine.high %v688_v36, %v688_v36  ;;  %v398_v39 = vsel %vm380_vm2, %v688_v36, 0.0 }
  0xa6   : > { %v383_v40 = vadd.f32 %v382_v37, %v381_v32  ;;  %v416_v41 = vsel %vm380_vm2, %v412_v34, 0.0 }
  0xa7   : > { %v417_v42 = vadd.f32 %v416_v41, %v415_v35  ;;  %v399_v43 = vsel %vm380_vm2, %v395_v38, 0.0 }
  0xa8   : > { %384 = vadd.xlane.f32.xlu0 %v383_v40  ;;  %v400_v44 = vadd.f32 %v399_v43, %v398_v39 }
  0xa9   : > { %418 = vadd.xlane.f32.xlu1 %v417_v42 }
  0xac   : > { %401 = vadd.xlane.f32.xlu0 %v400_v44 }
 0x135   : > { %v385_v45 = vpop.xlane.xlu0 %384 }
 0x136   : > { %420 = vst [vmem:[%s300_s9] sm:$0x3] %v385_v45  ;;  %v419_v46 = vpop.xlane.xlu1 %418 }
 0x137   : > { %422 = vst [vmem:[%s314_s28] sm:$0x3] %v419_v46 }
 0x139   : > { %v402_v47 = vpop.xlane.xlu0 %401 }
 0x13a   : > { %421 = vst [vmem:[%s307_s27] sm:$0x3] %v402_v47 }
 0x13b PF: > { %s428_s21 = sand.u32 1, %s1157_s26   ;;  %s1329_s8 = sshll.u32 %s1058_s22, 5 }
 0x13c   : > { %s1335_s5 = scalar_lea.hbm %s1469_s3, %s1329_s8  ;;  %s464_s29 = sshll.u32 %s307_s27, 4  ;;  %s1339_s29 = int_to_ptr.vmem [resolvable:$true] %s464_s29 }
 0x13d   : > { %s1345_s26 = scalar_lea.hbm %s1468_s2, %s1329_s8  ;;  %s1347_s22 = scalar_lea.sflag [#allocation12], %s428_s21 }
 0x13e   : > { %s884_s6 = scalar_lea.vmem %s1339_s29, 32  ;;  %p1499_p5 = scmp.ne.s32.totalorder %s1488_s30, 0 }
 0x13f   : > { %p885_p11 = scmp.ne.s32.totalorder %s1339_s29, %s884_s6  ;;  %s1075_s13 = smov [#allocation11]  }
 0x140   : > { %s888_s10 = sshll.u32 %s1075_s13, 4  ;;  %s889_s10 = int_to_ptr.vmem [resolvable:$false] %s888_s10 }
 0x141   : > { %p886_p13 = pnand %p885_p11, %p1499_p5  ;;  %s890_s27 = scalar_lea.vmem %s889_s10, 64 }
 0x142   : > { %p891_p4 = scmp.lt.s32.totalorder %s1339_s29, %s889_s10  ;;  %p892_p6 = scmp.lt.s32.totalorder %s890_s27, %s884_s6 }
 0x143   : > { %p887_p0 = pneg %p886_p13 }
 0x144   : > { %p893_p12 = por %p892_p6, %p891_p4 }
 0x146   : > { %p894_p2 = pnand %p893_p12, %p887_p0 }
 0x148   : > { %897 = shalt.err (!%p894_p2)
}
 0x149   : > { %s898_s21 = scalar_lea.hbm %s1335_s5, 32  ;;  %s902_s12 = scalar_lea.hbm %s1469_s3, 64 }
 0x14a   : > { %p899_p8 = scmp.ne.s32.totalorder %s1335_s5, %s898_s21  ;;  %p903_p9 = scmp.lt.u32.totalorder %s1335_s5, %s1469_s3 }
 0x14b   : > { %p904_p7 = scmp.lt.u32.totalorder %s902_s12, %s898_s21  ;;  %p906_p11 = scmp.lt.u32.totalorder %s898_s21, %s1335_s5 }
 0x14c   : > { %p900_p10 = pnand %p899_p8, %p1499_p5 }
 0x14d   : > { %p905_p3 = por %p904_p7, %p903_p9 }
 0x14e   : > { %p901_p1 = pneg %p900_p10 }
 0x14f   : > { %p907_p13 = por %p906_p11, %p905_p3 }
 0x151   : > { %p908_p0 = pnand %p907_p13, %p901_p1 }
 0x153   : > { %911 = shalt.err (!%p908_p0)
}
 0x154   : > { %705 = dma.vmem_to_hbm [thread:$0]  (%p1499_p5), %s1339_s29, 32, %s1335_s5, %s1347_s22  }
 0x155   : > { %s449_s6 = sshll.u32 %s300_s9, 4  ;;  %s1377_s21 = scalar_lea.hbm %s1470_s4, %s1329_s8  ;;  %s1379_s6 = int_to_ptr.vmem [resolvable:$true] %s449_s6 }
 0x156   : > { %s1383_s7 = sshll.u32 %s314_s28, 4  ;;  %s424_s23 = scalar_lea.sflag [#allocation7], %s298_s0  ;;  %s480_s7 = int_to_ptr.vmem [resolvable:$true] %s1383_s7 }
 0x157   : > { %s912_s12 = scalar_lea.vmem %s1379_s6, 32  ;;  %s1076_s9 = smov [#allocation10]  }
 0x158   : > { %p913_p4 = scmp.ne.s32.totalorder %s1379_s6, %s912_s12  ;;  %s916_s5 = sshll.u32 %s1076_s9, 4  ;;  %s917_s5 = int_to_ptr.vmem [resolvable:$false] %s916_s5 }
 0x159   : > { %s918_s8 = scalar_lea.vmem %s917_s5, 64  ;;  %p919_p2 = scmp.lt.s32.totalorder %s1379_s6, %s917_s5 }
 0x15a   : > { %p914_p6 = pnand %p913_p4, %p1499_p5  ;;  %p920_p8 = scmp.lt.s32.totalorder %s918_s8, %s912_s12 }
 0x15c   : > { %p915_p12 = pneg %p914_p6  ;;  %p921_p10 = por %p920_p8, %p919_p2 }
 0x15e   : > { %p922_p1 = pnand %p921_p10, %p915_p12 }
 0x160   : > { %925 = shalt.err (!%p922_p1)
}
 0x161   : > { %s926_s0 = scalar_lea.hbm %s1345_s26, 32  ;;  %s930_s29 = scalar_lea.hbm %s1468_s2, 64 }
 0x162   : > { %p927_p9 = scmp.ne.s32.totalorder %s1345_s26, %s926_s0  ;;  %p931_p11 = scmp.lt.u32.totalorder %s1345_s26, %s1468_s2 }
 0x163   : > { %p932_p13 = scmp.lt.u32.totalorder %s930_s29, %s926_s0  ;;  %p934_p4 = scmp.lt.u32.totalorder %s926_s0, %s1345_s26 }
 0x164   : > { %p928_p7 = pnand %p927_p9, %p1499_p5 }
 0x165   : > { %p933_p0 = por %p932_p13, %p931_p11 }
 0x166   : > { %p929_p3 = pneg %p928_p7 }
 0x167   : > { %p935_p6 = por %p934_p4, %p933_p0 }
 0x169   : > { %p936_p12 = pnand %p935_p6, %p929_p3 }
 0x16b   : > { %939 = shalt.err (!%p936_p12)
}
 0x16c   : > { %704 = dma.vmem_to_hbm [thread:$0]  (%p1499_p5), %s1379_s6, 32, %s1345_s26, %s424_s23  }
 0x16d   : > { %s940_s10 = scalar_lea.vmem %s480_s7, 32  ;;  %s1077_s27 = smov [#allocation13]  }
 0x16e   : > { %p941_p2 = scmp.ne.s32.totalorder %s480_s7, %s940_s10  ;;  %s944_s12 = sshll.u32 %s1077_s27, 4  ;;  %s945_s12 = int_to_ptr.vmem [resolvable:$false] %s944_s12 }
 0x16f   : > { %s946_s9 = scalar_lea.vmem %s945_s12, 64  ;;  %p947_p1 = scmp.lt.s32.totalorder %s480_s7, %s945_s12 }
 0x170   : > { %p942_p8 = pnand %p941_p2, %p1499_p5  ;;  %p948_p9 = scmp.lt.s32.totalorder %s946_s9, %s940_s10 }
 0x172   : > { %p943_p10 = pneg %p942_p8  ;;  %p949_p7 = por %p948_p9, %p947_p1 }
 0x174   : > { %p950_p3 = pnand %p949_p7, %p943_p10 }
 0x176   : > { %953 = shalt.err (!%p950_p3)
}
 0x177   : > { %s954_s26 = scalar_lea.hbm %s1377_s21, 32  ;;  %s958_s5 = scalar_lea.hbm %s1470_s4, 64 }
 0x178   : > { %p955_p11 = scmp.ne.s32.totalorder %s1377_s21, %s954_s26  ;;  %p959_p4 = scmp.lt.u32.totalorder %s1377_s21, %s1470_s4 }
 0x179   : > { %p960_p6 = scmp.lt.u32.totalorder %s958_s5, %s954_s26  ;;  %p962_p2 = scmp.lt.u32.totalorder %s954_s26, %s1377_s21 }
 0x17a   : > { %p956_p13 = pnand %p955_p11, %p1499_p5 }
 0x17b   : > { %p961_p12 = por %p960_p6, %p959_p4 }
 0x17c   : > { %p957_p0 = pneg %p956_p13 }
 0x17d   : > { %p963_p8 = por %p962_p2, %p961_p12 }
 0x17f   : > { %p964_p10 = pnand %p963_p8, %p957_p0 }
 0x181   : > { %967 = shalt.err (!%p964_p10)
}
 0x182   : > { %706 = dma.vmem_to_hbm [thread:$0]  (%p1499_p5), %s480_s7, 32, %s1377_s21, %s1347_s22  }
 0x183 PF: > { %p728_p1 = scmp.ge.s32.totalorder %s1070_s25, 2  ;;  %s491_s24 = sand.u32 1, %s1030_s15  }
 0x184   : > { %p1500_p9 = scmp.ne.s32.totalorder %s1489_s11, 0  ;;  %s492_s28 = scalar_lea.sflag [#allocation7], %s491_s24 }
 0x186   : > { %p718_p7 = pnand %p728_p1, %p1500_p9 }
 0x188   : > { %1021 = dma.done.wait (!%p718_p7), %s492_s28, 32  }
 0x189   : > { %1023 = vsyncadd (!%p718_p7), %s492_s28, 4294967264  ;;  %s1501_s29 = sadd.s32 4294967294, %s1070_s25  }
 0x18a   : > { %s500_s18 = sand.u32 1, %s1501_s29  }
 0x18b   : > { %s501_s13 = scalar_lea.sflag [#allocation12], %s500_s18 }
 0x18c   : > { %1025 = dma.done.wait (!%p718_p7), %s501_s13, 64  }
 0x18d   : > { %1027 = vsyncadd (!%p718_p7), %s501_s13, 4294967232  ;;  %s27_s25 = sadd.s32 1, %s1070_s25   ;;  %s1502_s30 = sld [smem:[#allocation22_spill]] }
 0x18e   : > { %p24_p5 = scmp.ge.s32.totalorder %s27_s25, 6   ;;  %s1503_s21 = sld [smem:[#allocation18_spill]] }
 0x18f   : > { %s1504_s22 = sld [smem:[#allocation19_spill]]  ;;  %s1505_s23 = sld [smem:[#allocation20_spill]] }
 0x190   : > { %s1506_s24 = sld [smem:[#allocation21_spill]]  ;;  %s1507_s15 = smov %s1034_s16 }
 0x191   : > { %s1508_s16 = smov %s1038_s17  ;;  %s1509_s17 = smov %s1195_s14 }
 0x192   : > { %s1510_s18 = smov %s1046_s19  ;;  %s1511_s19 = smov %s1050_s20 }
 0x193   : > { %s1512_s20 = smov %s1502_s30  ;;  %26 = sbr.rel (!%p24_p5) target bundleno = 15 (0xf), region = 126 }
 0x19a   :  { %515 = vsyncpa [#allocation6], 1 }
 0x19b   :  { %517 = vsyncpa [#allocation6 + $0x1], 1 }
 0x19c   :  { %518 = vsyncpa [#allocation9], 1 }
 0x19d   :  { %520 = vsyncpa [#allocation9 + $0x1], 1 }
 0x19e   :  { %521 = vsyncpa [#allocation7], 1 }
 0x19f   :  { %523 = vsyncpa [#allocation7 + $0x1], 1 }
 0x1a0   :  { %524 = vsyncpa [#allocation12], 1 }
 0x1a1   :  { %526 = vsyncpa [#allocation12 + $0x1], 1 }

</bundles_post_ra>
